<compile_context>
chip_gen: v7x
topology: tpu7x:2x2x1
jax: 0.10.0
libtpu: 0.0.40
codegen_flags: <defaults>
</compile_context>

<pallas_src>
import functools
import math

import jax
import jax.numpy as jnp
import numpy as np
from jax.experimental import pallas as pl
from jax.experimental.pallas import tpu as pltpu

_INV_SQRT2 = 1.0 / math.sqrt(2.0)
_SQRT_2_OVER_PI = math.sqrt(2.0 / math.pi)


def _round_up(a, m):
    return ((a + m - 1) // m) * m


def _vmem_capacity_bytes():
    """Per-TensorCore VMEM capacity; conservative fallback = v7x (64 MiB)."""
    try:
        info = pltpu.get_tpu_info()
        cap = getattr(info, "vmem_capacity_bytes", None)
        if cap:
            return int(cap)
    except Exception:
        pass
    return 64 * 1024 * 1024


def _resident_spec(block_shape, index_map):
    """BlockSpec for a constant-index (resident) operand: single-buffered."""
    if hasattr(pl, "Buffered"):
        try:
            return pl.BlockSpec(block_shape, index_map, pipeline_mode=pl.Buffered(1))
        except Exception:
            pass
    return pl.BlockSpec(block_shape, index_map)


def _gelu(h, approximate):
    if approximate:
        # tanh form -> EUP slot (free under the MXU); not bit-identical to torch erf GELU.
        return 0.5 * h * (1.0 + jnp.tanh(_SQRT_2_OVER_PI * (h + 0.044715 * h * h * h)))
    return 0.5 * h * (1.0 + jax.lax.erf(h * _INV_SQRT2))


# ---------------------------------------------------------------------------
# Kernels
# ---------------------------------------------------------------------------
def _mlp_kernel(x_ref, w1_ref, b1_ref, w2_ref, b2_ref, o_ref, *, approximate_gelu):
    # x_ref:  (TILE_N, IN)       streamed over tokens
    # w1_ref: (IN, HID_P)        resident (Buffered(1))
    # b1_ref: (1, HID_P)         resident
    # w2_ref: (HID_P, OUT_P)     resident
    # b2_ref: (1, OUT_P)         resident
    # o_ref:  (TILE_N, OUT_P)
    w1 = w1_ref[...]
    w2 = w2_ref[...]
    x = x_ref[...].astype(w1.dtype)

    h = jnp.dot(x, w1, preferred_element_type=jnp.float32)
    h = h + b1_ref[...].astype(jnp.float32)
    h = _gelu(h, approximate_gelu)
    # dropout(p=0.0) is the identity -> nothing to do.

    o = jnp.dot(h.astype(w2.dtype), w2, preferred_element_type=jnp.float32)
    o = o + b2_ref[...].astype(jnp.float32)
    o_ref[...] = o.astype(o_ref.dtype)


def _mlp_kernel_htiled(x_ref, w1_ref, b1_ref, w2_ref, b2_ref, o_ref, acc_ref, *,
                       approximate_gelu):
    # Hidden-dim tiled variant: grid = (token tiles, hidden tiles), hidden last.
    # x_ref:  (TILE_N, IN)      constant along k
    # w1_ref: (IN, TILE_H)      streamed along k
    # b1_ref: (1, TILE_H)       streamed along k
    # w2_ref: (TILE_H, OUT_P)   streamed along k
    # b2_ref: (1, OUT_P)        resident
    # o_ref:  (TILE_N, OUT_P)   written at the last k
    # acc_ref:(TILE_N, OUT_P)   f32 VMEM accumulator
    k = pl.program_id(1)

    @pl.when(k == 0)
    def _():
        acc_ref[...] = jnp.zeros_like(acc_ref)

    w1 = w1_ref[...]
    w2 = w2_ref[...]
    x = x_ref[...].astype(w1.dtype)

    h = jnp.dot(x, w1, preferred_element_type=jnp.float32)
    h = h + b1_ref[...].astype(jnp.float32)
    h = _gelu(h, approximate_gelu)
    acc_ref[...] += jnp.dot(h.astype(w2.dtype), w2, preferred_element_type=jnp.float32)

    @pl.when(k == pl.num_programs(1) - 1)
    def _():
        o_ref[...] = (acc_ref[...] + b2_ref[...].astype(jnp.float32)).astype(o_ref.dtype)


# ---------------------------------------------------------------------------
# Wrapper
# ---------------------------------------------------------------------------
def mlp_pallas(x, w1, b1, w2, b2, *, tile_n=512, tile_h=512,
               approximate_gelu=False, force_hidden_tiling=False):
    """x: (..., in_features) -> (..., out_features).

    Weights are stored transposed vs torch: w1 (in, hidden), w2 (hidden, out).
    """
    in_f, hid = w1.shape
    out_f = w2.shape[1]
    lead_shape = x.shape[:-1]
    out_dtype = x.dtype

    # Stream x in the weight dtype when that is narrower (halves input DMA bytes
    # and removes a per-tile VPU cast); accumulation / bias / GELU stay f32.
    if jnp.dtype(w1.dtype).itemsize < jnp.dtype(x.dtype).itemsize:
        x_stream_dtype = jnp.dtype(w1.dtype)
    else:
        x_stream_dtype = jnp.dtype(x.dtype)
    xf = x.reshape(-1, in_f).astype(x_stream_dtype)
    n = xf.shape[0]

    xs_bytes = jnp.dtype(x_stream_dtype).itemsize
    o_bytes = jnp.dtype(out_dtype).itemsize
    w_bytes = jnp.dtype(w1.dtype).itemsize

    # Sublane multiple of the streamed activation dtype (8 f32 / 16 bf16 / 32 int8).
    sub = max(8, 32 // xs_bytes)

    # Lane-dense padding of the hidden / output feature dims (zero-pad => exact).
    out_p = _round_up(out_f, 128)
    hid_p = _round_up(hid, 128)

    vmem_cap = _vmem_capacity_bytes()
    budget = (vmem_cap * 3) // 4            # 48 MiB on v7x, 96 MiB on v5e/v6e
    limit_cap = max(vmem_cap - (8 << 20), 16 << 20)

    # --- token tile: large (fills MXU rows, few grid steps), >=2 grid steps so
    # both TensorCores on dual-core parts get work, rounded to sublane multiple.
    tile_n = max(sub, _round_up(min(int(tile_n), _round_up(n, sub)), sub))
    if n > sub:
        tile_n = min(tile_n, _round_up((n + 1) // 2, sub))

    def vmem_single(tn):
        return (2 * tn * in_f * xs_bytes                       # x tiles (double buffered)
                + 2 * tn * out_p * o_bytes                     # out tiles (double buffered)
                + (in_f * hid_p + hid_p * out_p + hid_p + out_p) * w_bytes  # resident (1x)
                + 2 * tn * hid_p * 4)                          # f32 hidden intermediate + headroom

    def vmem_htiled(tn, th):
        return (2 * tn * in_f * xs_bytes
                + 2 * tn * out_p * o_bytes
                + 2 * (in_f * th + th * out_p + th) * w_bytes  # streamed weight tiles (2x)
                + out_p * w_bytes                              # resident b2
                + tn * out_p * 4                               # f32 accumulator scratch
                + 2 * tn * th * 4)                             # f32 hidden intermediate

    use_htiled = bool(force_hidden_tiling)
    if not use_htiled:
        tn = tile_n
        # Prefer keeping tile_n large; below 256 rows switch to hidden tiling instead.
        while vmem_single(tn) > budget and tn > 256:
            tn = max(sub, _round_up(tn // 2, sub))
        if vmem_single(tn) <= budget:
            tile_n = tn
        else:
            use_htiled = True

    if use_htiled:
        th = max(128, _round_up(min(int(tile_h), hid_p), 128))
        while vmem_htiled(tile_n, th) > budget and th > 128:
            th = max(128, _round_up(th // 2, 128))
        while vmem_htiled(tile_n, th) > budget and tile_n > sub:
            tile_n = max(sub, _round_up(tile_n // 2, sub))
        tile_h = th
        hid_p = _round_up(hid, tile_h)
        needed = vmem_htiled(tile_n, tile_h)
    else:
        needed = vmem_single(tile_n)

    vmem_limit = int(min(max(needed + (4 << 20), 16 << 20), limit_cap))

    # --- pad weights / biases (zeros => numerically exact, output sliced back).
    w1p = w1
    b1p = b1.reshape(1, hid)
    w2p = w2
    b2p = b2.reshape(1, out_f)
    if hid_p != hid:
        w1p = jnp.pad(w1p, ((0, 0), (0, hid_p - hid)))
        b1p = jnp.pad(b1p, ((0, 0), (0, hid_p - hid)))
        w2p = jnp.pad(w2p, ((0, hid_p - hid), (0, 0)))
    if out_p != out_f:
        w2p = jnp.pad(w2p, ((0, 0), (0, out_p - out_f)))
        b2p = jnp.pad(b2p, ((0, 0), (0, out_p - out_f)))

    # --- pad the token axis instead of asserting divisibility.
    n_pad = _round_up(max(n, tile_n), tile_n)
    if n_pad != n:
        xf = jnp.pad(xf, ((0, n_pad - n), (0, 0)))

    cost = pl.CostEstimate(
        flops=2 * n_pad * (in_f * hid_p + hid_p * out_p),
        transcendentals=n_pad * hid_p,
        bytes_accessed=(n_pad * in_f * xs_bytes
                        + n_pad * out_p * o_bytes
                        + (in_f * hid_p + hid_p * out_p + hid_p + out_p) * w_bytes),
    )

    if not use_htiled:
        kernel = functools.partial(_mlp_kernel, approximate_gelu=approximate_gelu)
        out = pl.pallas_call(
            kernel,
            out_shape=jax.ShapeDtypeStruct((n_pad, out_p), out_dtype),
            grid_spec=pltpu.PrefetchScalarGridSpec(
                num_scalar_prefetch=0,
                grid=(n_pad // tile_n,),
                in_specs=[
                    pl.BlockSpec((tile_n, in_f), lambda i: (i, 0)),
                    _resident_spec((in_f, hid_p), lambda i: (0, 0)),
                    _resident_spec((1, hid_p), lambda i: (0, 0)),
                    _resident_spec((hid_p, out_p), lambda i: (0, 0)),
                    _resident_spec((1, out_p), lambda i: (0, 0)),
                ],
                out_specs=pl.BlockSpec((tile_n, out_p), lambda i: (i, 0)),
            ),
            compiler_params=pltpu.CompilerParams(
                dimension_semantics=("parallel",),
                vmem_limit_bytes=vmem_limit,
            ),
            cost_estimate=cost,
        )(xf, w1p, b1p, w2p, b2p)
    else:
        kernel = functools.partial(_mlp_kernel_htiled, approximate_gelu=approximate_gelu)
        out = pl.pallas_call(
            kernel,
            out_shape=jax.ShapeDtypeStruct((n_pad, out_p), out_dtype),
            grid_spec=pltpu.PrefetchScalarGridSpec(
                num_scalar_prefetch=0,
                grid=(n_pad // tile_n, hid_p // tile_h),
                in_specs=[
                    pl.BlockSpec((tile_n, in_f), lambda i, k: (i, 0)),
                    pl.BlockSpec((in_f, tile_h), lambda i, k: (0, k)),
                    pl.BlockSpec((1, tile_h), lambda i, k: (0, k)),
                    pl.BlockSpec((tile_h, out_p), lambda i, k: (k, 0)),
                    _resident_spec((1, out_p), lambda i, k: (0, 0)),
                ],
                out_specs=pl.BlockSpec((tile_n, out_p), lambda i, k: (i, 0)),
                scratch_shapes=[pltpu.VMEM((tile_n, out_p), jnp.float32)],
            ),
            compiler_params=pltpu.CompilerParams(
                dimension_semantics=("parallel", "arbitrary"),
                vmem_limit_bytes=vmem_limit,
            ),
            cost_estimate=cost,
        )(xf, w1p, b1p, w2p, b2p)

    out = out[:n, :out_f]
    return out.reshape(*lead_shape, out_f)


# ---------------------------------------------------------------------------
# Reference / init helpers
# ---------------------------------------------------------------------------
def xavier_uniform(key, fan_in, fan_out, shape, dtype=jnp.float32):
    bound = math.sqrt(6.0 / (fan_in + fan_out))
    return jax.random.uniform(key, shape, dtype=dtype, minval=-bound, maxval=bound)


def mlp_reference(x, w1, b1, w2, b2):
    h = x @ w1 + b1
    h = 0.5 * h * (1.0 + jax.lax.erf(h * _INV_SQRT2))
    return h @ w2 + b2


# TODO(synk): dropout is only implemented for p == 0.0 (identity), matching the
# module's default; training-mode dropout with p > 0 would need an in-kernel PRNG.

if __name__ == "__main__":
    # NAT-style tokens = B*H*W, feature-last; small shapes consistent with the module.
    batch, height, width = 2, 8, 8
    in_features, hidden_features, out_features = 32, 64, 32

    key = jax.random.PRNGKey(0)
    kx, k1, k2, k3, k4 = jax.random.split(key, 5)

    x = jax.random.normal(kx, (batch, height, width, in_features), dtype=jnp.float32)

    # torch fc1.weight is (hidden, in) -> stored transposed (in, hidden); the
    # xavier_uniform bound only depends on fan_in + fan_out, so it is identical.
    w1 = xavier_uniform(k1, in_features, hidden_features, (in_features, hidden_features))
    b1 = jnp.zeros((hidden_features,), jnp.float32)
    w2 = xavier_uniform(k2, hidden_features, out_features, (hidden_features, out_features))
    b2 = jnp.zeros((out_features,), jnp.float32)

    y_ref = mlp_reference(x.reshape(-1, in_features), w1, b1, w2, b2)
    y_ref = y_ref.reshape(batch, height, width, out_features)

    # 1) f32 path: must match the exact torch numerics.
    y = jax.block_until_ready(mlp_pallas(x, w1, b1, w2, b2))
    np.testing.assert_allclose(np.asarray(y), np.asarray(y_ref), rtol=1e-5, atol=1e-5)

    # 2) padding path: token count not divisible by the tile size.
    x_odd = jax.random.normal(jax.random.PRNGKey(1), (3, 5, in_features), dtype=jnp.float32)
    y_odd = jax.block_until_ready(mlp_pallas(x_odd, w1, b1, w2, b2))
    y_odd_ref = mlp_reference(x_odd.reshape(-1, in_features), w1, b1, w2, b2)
    np.testing.assert_allclose(np.asarray(y_odd).reshape(-1, out_features),
                               np.asarray(y_odd_ref), rtol=1e-5, atol=1e-5)

    # 3) bf16-weight path: x is cast to bf16 in the wrapper and streamed as bf16;
    #    accumulation / bias / GELU stay f32.
    y_bf16 = jax.block_until_ready(
        mlp_pallas(x, w1.astype(jnp.bfloat16), b1, w2.astype(jnp.bfloat16), b2))
    np.testing.assert_allclose(np.asarray(y_bf16), np.asarray(y_ref), rtol=1e-1, atol=1e-1)

    # 4) hidden-tiled fallback path (forced): larger hidden dim, tile_h=128 -> 2 k-steps,
    #    exercises the f32 accumulator + pl.when init / final writeback.
    hid_big = 256
    w1b = xavier_uniform(k3, in_features, hid_big, (in_features, hid_big))
    b1b = jnp.zeros((hid_big,), jnp.float32)
    w2b = xavier_uniform(k4, hid_big, out_features, (hid_big, out_features))
    b2b = jnp.zeros((out_features,), jnp.float32)
    y_ht = jax.block_until_ready(
        mlp_pallas(x, w1b, b1b, w2b, b2b, tile_h=128, force_hidden_tiling=True))
    y_ht_ref = mlp_reference(x.reshape(-1, in_features), w1b, b1b, w2b, b2b)
    np.testing.assert_allclose(np.asarray(y_ht).reshape(-1, out_features),
                               np.asarray(y_ht_ref), rtol=1e-5, atol=1e-5)

    print("KERNEL_OK")
</pallas_src>

<mosaic_0001>
module attributes {stable_mosaic.version = 11 : i64} {
  func.func @_mlp_kernel(%arg0: i32, %arg1: memref<64x32xf32, #tpu.memory_space<vmem>>, %arg2: memref<32x128xf32, #tpu.memory_space<vmem>>, %arg3: memref<1x128xf32, #tpu.memory_space<vmem>>, %arg4: memref<128x128xf32, #tpu.memory_space<vmem>>, %arg5: memref<1x128xf32, #tpu.memory_space<vmem>>, %arg6: memref<64x128xf32, #tpu.memory_space<vmem>>) attributes {dimension_semantics = [#tpu.dimension_semantics<parallel>], iteration_bounds = array<i64: 2>, scalar_prefetch = 0 : i64, scratch_operands = 0 : i64, tpu.core_type = #tpu.core_type<tc>, window_params = [{transform_indices = @transform_0, window_bounds = array<i64: 64, 32>}, {pipeline_mode = #tpu.pipeline_mode<synchronous>, transform_indices = @transform_1, window_bounds = array<i64: 32, 128>}, {pipeline_mode = #tpu.pipeline_mode<synchronous>, transform_indices = @transform_2, window_bounds = array<i64: 1, 128>}, {pipeline_mode = #tpu.pipeline_mode<synchronous>, transform_indices = @transform_3, window_bounds = array<i64: 128, 128>}, {pipeline_mode = #tpu.pipeline_mode<synchronous>, transform_indices = @transform_4, window_bounds = array<i64: 1, 128>}, {transform_indices = @transform_5, window_bounds = array<i64: 64, 128>}]} {
    %c0 = arith.constant 0 : index
    %c0_0 = arith.constant 0 : index
    %0 = vector.load %arg2[%c0, %c0_0] : memref<32x128xf32, #tpu.memory_space<vmem>>, vector<32x128xf32>
    %c0_1 = arith.constant 0 : index
    %c0_2 = arith.constant 0 : index
    %1 = vector.load %arg4[%c0_1, %c0_2] : memref<128x128xf32, #tpu.memory_space<vmem>>, vector<128x128xf32>
    %c0_3 = arith.constant 0 : index
    %c0_4 = arith.constant 0 : index
    %2 = vector.load %arg1[%c0_3, %c0_4] : memref<64x32xf32, #tpu.memory_space<vmem>>, vector<64x32xf32>
    %cst = arith.constant dense<0.000000e+00> : vector<64x128xf32>
    %3 = tpu.matmul %2, %0, %cst {dimension_numbers = #tpu.dot_dimension_numbers<[1], [0], [0], [1], [0, 0, 1, 1], [], []>} : vector<64x32xf32>, vector<32x128xf32>, vector<64x128xf32> -> vector<64x128xf32>
    %c0_5 = arith.constant 0 : index
    %c0_6 = arith.constant 0 : index
    %4 = vector.load %arg3[%c0_5, %c0_6] : memref<1x128xf32, #tpu.memory_space<vmem>>, vector<1x128xf32>
    %5 = vector.broadcast %4 : vector<1x128xf32> to vector<64x128xf32>
    %6 = arith.addf %3, %5 : vector<64x128xf32>
    %cst_7 = arith.constant 5.000000e-01 : f32
    %7 = vector.broadcast %cst_7 : f32 to vector<64x128xf32>
    %8 = arith.mulf %7, %6 : vector<64x128xf32>
    %cst_8 = arith.constant 0.707106769 : f32
    %9 = vector.broadcast %cst_8 : f32 to vector<64x128xf32>
    %10 = arith.mulf %6, %9 : vector<64x128xf32>
    %11 = math.erf %10 : vector<64x128xf32>
    %cst_9 = arith.constant 1.000000e+00 : f32
    %12 = vector.broadcast %cst_9 : f32 to vector<64x128xf32>
    %13 = arith.addf %12, %11 : vector<64x128xf32>
    %14 = arith.mulf %8, %13 : vector<64x128xf32>
    %cst_10 = arith.constant dense<0.000000e+00> : vector<64x128xf32>
    %15 = tpu.matmul %14, %1, %cst_10 {dimension_numbers = #tpu.dot_dimension_numbers<[1], [0], [0], [1], [0, 0, 1, 1], [], []>} : vector<64x128xf32>, vector<128x128xf32>, vector<64x128xf32> -> vector<64x128xf32>
    %c0_11 = arith.constant 0 : index
    %c0_12 = arith.constant 0 : index
    %16 = vector.load %arg5[%c0_11, %c0_12] : memref<1x128xf32, #tpu.memory_space<vmem>>, vector<1x128xf32>
    %17 = vector.broadcast %16 : vector<1x128xf32> to vector<64x128xf32>
    %18 = arith.addf %15, %17 : vector<64x128xf32>
    %c0_13 = arith.constant 0 : index
    %c0_14 = arith.constant 0 : index
    %19 = vector.load %arg6[%c0_13, %c0_14] : memref<64x128xf32, #tpu.memory_space<vmem>>, vector<64x128xf32>
    tpu.vector_store %arg6[%c0_13, %c0_14], %18 {strides = array<i32>} : memref<64x128xf32, #tpu.memory_space<vmem>>, vector<64x128xf32>,
    return
  }
  func.func @transform_0(%arg0: i32) -> (i32, i32) {
    %c0_i32 = arith.constant 0 : i32
    %c0_i32_0 = arith.constant 0 : i32
    return %arg0, %c0_i32 : i32, i32
  }
  func.func @transform_1(%arg0: i32) -> (i32, i32) {
    %c0_i32 = arith.constant 0 : i32
    %c0_i32_0 = arith.constant 0 : i32
    %c0_i32_1 = arith.constant 0 : i32
    return %c0_i32, %c0_i32_0 : i32, i32
  }
  func.func @transform_2(%arg0: i32) -> (i32, i32) {
    %c0_i32 = arith.constant 0 : i32
    %c0_i32_0 = arith.constant 0 : i32
    %c0_i32_1 = arith.constant 0 : i32
    return %c0_i32, %c0_i32_0 : i32, i32
  }
  func.func @transform_3(%arg0: i32) -> (i32, i32) {
    %c0_i32 = arith.constant 0 : i32
    %c0_i32_0 = arith.constant 0 : i32
    %c0_i32_1 = arith.constant 0 : i32
    return %c0_i32, %c0_i32_0 : i32, i32
  }
  func.func @transform_4(%arg0: i32) -> (i32, i32) {
    %c0_i32 = arith.constant 0 : i32
    %c0_i32_0 = arith.constant 0 : i32
    %c0_i32_1 = arith.constant 0 : i32
    return %c0_i32, %c0_i32_0 : i32, i32
  }
  func.func @transform_5(%arg0: i32) -> (i32, i32) {
    %c0_i32 = arith.constant 0 : i32
    %c0_i32_0 = arith.constant 0 : i32
    return %arg0, %c0_i32 : i32, i32
  }
}

</mosaic_0001>

<bundles_post_ra>
// kernel: tpu_custom_call.1
= control target key start
LH: loop header
LB: loop body
LE: loop exit
PB: predicated region body
PF: predicated region fallthrough
CT: control target
= control target key end

     0   :  { %10 = vsyncpa [#allocation3], 0  ;;  %s1140_s0 = inlined_call_operand.vmem [shape: f32[128,32], index: 0, kind: input, shape index: {}]   ;;  %s1141_s1 = inlined_call_operand.vmem [shape: f32[32,128], index: 1, kind: input, shape index: {}]   ;;  %s1142_s2 = inlined_call_operand.vmem [shape: f32[1,128], index: 2, kind: input, shape index: {}]   ;;  %s1143_s3 = inlined_call_operand.vmem [shape: f32[128,128], index: 3, kind: input, shape index: {}]   ;;  %s1144_s4 = inlined_call_operand.vmem [shape: f32[1,128], index: 4, kind: input, shape index: {}]   ;;  %s1145_s5 = inlined_call_operand.hbm [shape: f32[128,128], index: 5, kind: output, shape index: {}]  }
   0x1   :  { %12 = vsyncpa [#allocation3 + $0x1], 0  ;;  %s960_s18 = smov 0   ;;  %s962_s19 = smov 0  }
   0x2   :  { %s964_s20 = smov 0   ;;  %s966_s21 = smov 0  }
   0x3 LB: > { %s981_s22 = sadd.s32 4294967295, %s925_s21   ;;  %s627_s23 = sadd.s32 4294967294, %s925_s21   ;;  %s925_s21 = sphi %s966_s21, %s1151_s21   ;;  %s921_s20 = sphi %s964_s20, %s1150_s20   ;;  %s917_s19 = sphi %s962_s19, %s1149_s19   ;;  %s913_s18 = sphi %s960_s18, %s1148_s18  }
   0x4   : > { %s985_s24 = sadd.s32 1, %s925_s21   ;;  %s135_s25 = sadd.s32 1, %s921_s20 }
   0x5   : > { %s132_s26 = ssub.s32 %s925_s21, %s985_s24  ;;  %p145_p0 = scmp.ne.s32.totalorder %s921_s20, %s917_s19 }
   0x6   : > { %p133_p1 = scmp.eq.s32.totalorder %s132_s26, 0  ;;  %p146_p2 = scmp.eq.s32.totalorder %s981_s22, 1 }
   0x7   : > { %p151_p3 = scmp.ne.s32.totalorder %s917_s19, %s913_s18  ;;  %p152_p4 = scmp.eq.s32.totalorder %s627_s23, 1 }
   0x8   : > { %s996_s27 = scalar_select %p133_p1, %s921_s20, %s135_s25  }
   0x9   : > { %p998_p5 = por %p146_p2, %p145_p0  ;;  %p1002_p6 = por %p152_p4, %p151_p3 }
   0xa   : > { %p630_p7 = scmp.ge.s32.totalorder %s925_s21, 1  ;;  %p191_p8 = scmp.lt.s32.totalorder %s925_s21, 3 }
   0xc   : > { %p192_p9 = pnand %p630_p7, %p191_p8 }
   0xd   : > { %v226_v0 = vld [vmem:[%s1141_s1] sm:$0xff] (!%p192_p9)  ;;  %v227_v1 = vld [vmem:[%s1141_s1 + $0x8] sm:$0xff] (!%p192_p9)  ;;  %v228_v2 = vld [vmem:[%s1141_s1 + $0x10] sm:$0xff] (!%p192_p9)  ;;  %s632_s11 = sshll.u32 (!%p192_p9), %s981_s22, 3  ;;  %vm261_vm0 = vcmask (!%p192_p9), 261120   ;;  %s216_s26 = sand.u32 (!%p192_p9), 1, %s917_s19  }
   0xe   : > { %195 = sbr.rel (%p192_p9) target bundleno = 501 (0x1f5), region = 40  ;;  %v750_v3 = vpack.c.bf16 (!%p192_p9), %v227_v1, %v226_v0  ;;  %v229_v4 = vld [vmem:[%s1141_s1 + $0x18] sm:$0xff] (!%p192_p9)  ;;  %p220_p10 = scmp.lt.s32.totalorder (!%p192_p9), %s632_s11, 15  ;;  %v230_v5 = vld [vmem:[%s1143_s3] sm:$0xff] (!%p192_p9)  ;;  %v231_v6 = vld [vmem:[%s1143_s3 + $0x8] sm:$0xff] (!%p192_p9) }
   0xf   : > { %v754_v7 = vpack.c.bf16 (!%p192_p9), %v229_v4, %v228_v2  ;;  %v758_v8 = vpack.c.bf16 (!%p192_p9), %v231_v6, %v230_v5  ;;  %v232_v9 = vld [vmem:[%s1143_s3 + $0x10] sm:$0xff] (!%p192_p9)  ;;  %v233_v10 = vld [vmem:[%s1143_s3 + $0x18] sm:$0xff] (!%p192_p9)  ;;  %v234_v12 = vld [vmem:[%s1143_s3 + $0x20] sm:$0xff] (!%p192_p9)  ;;  %s631_s30 = sshll.u32 (!%p192_p9), %s216_s26, 6  ;;  %s649_s9 = sshll.u32 (!%p192_p9), %s981_s22, 10 }
  0x10   : > { %751 = vmatprep.subr.bf16.mxu0 (!%p192_p9), %v750_v3  ;;  %v762_v11 = vpack.c.bf16 (!%p192_p9), %v233_v10, %v232_v9  ;;  %v235_v13 = vld [vmem:[%s1143_s3 + $0x28] sm:$0xff] (!%p192_p9)  ;;  %v236_v23 = vld [vmem:[%s1143_s3 + $0x30] sm:$0xff] (!%p192_p9)  ;;  %v237_v24 = vld [vmem:[%s1143_s3 + $0x38] sm:$0xff] (!%p192_p9)  ;;  %s218_s8 = scalar_lea.vmem (!%p192_p9), [#allocation2], %s631_s30  ;;  %s1099_s22 = scalar_lea.sflag (!%p192_p9), [#allocation3], %s216_s26 }
  0x11   : > { %753 = vmatpush3.bf16.msra.mxu0 (!%p192_p9), %v750_v3  ;;  %790 = vmatprep.subr.bf16.mxu1 (!%p192_p9), %v758_v8  ;;  %v766_v16 = vpack.c.bf16 (!%p192_p9), %v235_v13, %v234_v12  ;;  %v770_v25 = vpack.c.bf16 (!%p192_p9), %v237_v24, %v236_v23  ;;  %v238_v26 = vld [vmem:[%s1143_s3 + $0x40] sm:$0xff] (!%p192_p9)  ;;  %v239_v27 = vld [vmem:[%s1143_s3 + $0x48] sm:$0xff] (!%p192_p9)  ;;  %v240_v29 = vld [vmem:[%s1143_s3 + $0x50] sm:$0xff] (!%p192_p9)  ;;  %s565_s10 = sshll.u32 (!%p192_p9), %s218_s8, 4  ;;  %s927_s15 = smov (!%p192_p9), [#allocation2]   ;;  %s1095_s10 = int_to_ptr.vmem [resolvable:$true] %s565_s10 }
  0x12   : > { %755 = vmatprep.subr.bf16.mxu0 (!%p192_p9), %v754_v7  ;;  %798 = vmatpush3.bf16.msra.mxu1 (!%p192_p9), %v758_v8  ;;  %v774_v28 = vpack.c.bf16 (!%p192_p9), %v239_v27, %v238_v26  ;;  %v241_v30 = vld [vmem:[%s1143_s3 + $0x58] sm:$0xff] (!%p192_p9)  ;;  %v242_v32 = vld [vmem:[%s1143_s3 + $0x60] sm:$0xff] (!%p192_p9)  ;;  %v243_v33 = vld [vmem:[%s1143_s3 + $0x68] sm:$0xff] (!%p192_p9)  ;;  %s867_s16 = sshll.u32 (!%p192_p9), %s927_s15, 4  ;;  %s868_s16 = int_to_ptr.vmem [resolvable:$false] %s867_s16 }
  0x13   : > { %791 = vmatprep.subr.bf16.mxu1 (!%p192_p9), %v762_v11  ;;  %v778_v31 = vpack.c.bf16 (!%p192_p9), %v241_v30, %v240_v29  ;;  %v782_v34 = vpack.c.bf16 (!%p192_p9), %v243_v33, %v242_v32  ;;  %v244_v35 = vld [vmem:[%s1143_s3 + $0x70] sm:$0xff] (!%p192_p9)  ;;  %v245_v36 = vld [vmem:[%s1143_s3 + $0x78] sm:$0xff] (!%p192_p9)  ;;  %v634_v38 = vld [vmem:[%s1142_s2] ss:$0 sm:$0xff] (!%p192_p9)  ;;  %s869_s17 = scalar_lea.vmem (!%p192_p9), %s868_s16, 2048  ;;  %p870_p0 = scmp.lt.s32.totalorder (!%p192_p9), %s1095_s10, %s868_s16 }
  0x14   : > { %v786_v37 = vpack.c.bf16 (!%p192_p9), %v245_v36, %v244_v35 }
  0x15   : > { %s1153_s11 = smov (!%p220_p10, %s632_s11), 15  ;;  %757 = vmatpush3.bf16.msra.mxu0 %v754_v7 }
  0x16   : > { %s633_s6 = sshll.u32 %s1153_s11, 3  ;;  %759 = vmatprep.subr.bf16.mxu0 %v758_v8  ;;  %799 = vmatpush3.bf16.msra.mxu1 %v762_v11  ;;  %s863_s11 = scalar_lea.vmem %s1095_s10, 1024 }
  0x17   : > { %s223_s14 = scalar_lea.vmem %s1140_s0, %s633_s6  ;;  %792 = vmatprep.subr.bf16.mxu1 %v766_v16  ;;  %p864_p11 = scmp.ne.s32.totalorder %s1095_s10, %s863_s11 }
  0x18   : > { %v246_v14 = vld [vmem:[%s223_s14] sm:$0xff]  ;;  %v247_v15 = vld [vmem:[%s223_s14 + $0x8] sm:$0xff]  ;;  %v248_v17 = vld [vmem:[%s223_s14 + $0x10] sm:$0xff]  ;;  %p871_p1 = scmp.lt.s32.totalorder %s869_s17, %s863_s11 }
  0x19   : > { %694 = vmatprep.mubr.msk.f32.mxu0 %vm261_vm0, %v246_v14  ;;  %v249_v18 = vld [vmem:[%s223_s14 + $0x18] sm:$0xff]  ;;  %v250_v19 = vld [vmem:[%s223_s14 + $0x20] sm:$0xff]  ;;  %v251_v20 = vld [vmem:[%s223_s14 + $0x28] sm:$0xff]  ;;  %p865_p12 = pnand %p864_p11, %p998_p5 }
  0x1a   : > { %695 = vmatmul.mubr.msk.f32.vlgmr.msra.gmra.mrb[0].mxu0 %vm261_vm0, %v247_v15  ;;  %800 = vmatpush3.bf16.msra.mxu1 %v766_v16  ;;  %v252_v21 = vld [vmem:[%s223_s14 + $0x30] sm:$0xff]  ;;  %v253_v22 = vld [vmem:[%s223_s14 + $0x38] sm:$0xff]  ;;  %s1093_s14 = scalar_lea.hbm %s1145_s5, %s649_s9  ;;  %p872_p2 = por %p871_p1, %p870_p0 }
  0x1b   : > { %697 = vmatprep.mubr.msk.f32.mxu0 %vm261_vm0, %v248_v17  ;;  %761 = vmatpush3.bf16.msra.mxu0 %v758_v8  ;;  %p866_p13 = pneg %p865_p12 }
  0x1c   : > { %763 = vmatprep.subr.bf16.mxu0 %v762_v11  ;;  %793 = vmatprep.subr.bf16.mxu1 %v770_v25 }
  0x1d   : > { %p873_p3 = pnand %p872_p2, %p866_p13 }
  0x1e   : > { %698 = vmatmul.mubr.msk.f32.gmra.mrb[2].mxu0 %vm261_vm0, %v249_v18  ;;  %801 = vmatpush3.bf16.msra.mxu1 %v770_v25 }
  0x1f   : > { %700 = vmatprep.mubr.msk.f32.mxu0 %vm261_vm0, %v250_v19  ;;  %765 = vmatpush3.bf16.msra.mxu0 %v762_v11 }
  0x20   : > { %767 = vmatprep.subr.bf16.mxu0 %v766_v16  ;;  %794 = vmatprep.subr.bf16.mxu1 %v774_v28 }
  0x22   : > { %701 = vmatmul.mubr.msk.f32.gmra.mrb[4].mxu0 %vm261_vm0, %v251_v20  ;;  %802 = vmatpush3.bf16.msra.mxu1 %v774_v28 }
  0x23   : > { %703 = vmatprep.mubr.msk.f32.mxu0 %vm261_vm0, %v252_v21  ;;  %769 = vmatpush3.bf16.msra.mxu0 %v766_v16 }
  0x24   : > { %771 = vmatprep.subr.bf16.mxu0 %v770_v25  ;;  %795 = vmatprep.subr.bf16.mxu1 %v778_v31 }
  0x26   : > { %704 = vmatmul.mubr.msk.f32.gmra.mrb[6].mxu0 %vm261_vm0, %v253_v22  ;;  %803 = vmatpush3.bf16.msra.mxu1 %v778_v31 }
  0x27   : > { %773 = vmatpush3.bf16.msra.mxu0 %v770_v25  ;;  %796 = vmatprep.subr.bf16.mxu1 %v782_v34 }
  0x28   : > { %775 = vmatprep.subr.bf16.mxu0 %v774_v28 }
  0x2a   : > { %804 = vmatpush3.bf16.msra.mxu1 %v782_v34 }
  0x2b   : > { %777 = vmatpush3.bf16.msra.mxu0 %v774_v28  ;;  %797 = vmatprep.subr.bf16.mxu1 %v786_v37 }
  0x2c   : > { %779 = vmatprep.subr.bf16.mxu0 %v778_v31 }
  0x2e   : > { %805 = vmatpush3.bf16.msra.mxu1 %v786_v37 }
  0x2f   : > { %781 = vmatpush3.bf16.msra.mxu0 %v778_v31  ;;  %v643_v31 = vld [vmem:[%s1144_s4] ss:$0 sm:$0xff] }
  0x30   : > { %783 = vmatprep.subr.bf16.mxu0 %v782_v34 }
  0x33   : > { %785 = vmatpush3.bf16.msra.mxu0 %v782_v34 }
  0x34   : > { %787 = vmatprep.subr.bf16.mxu0 %v786_v37 }
  0x37   : > { %789 = vmatpush3.bf16.msra.mxu0 %v786_v37 }
  0xed   : > { %v696_v39 = vpop.f32.mrb[0].mxu0 }
  0xee   : > { %v358_v40 = vadd.f32 %v696_v39, %v634_v38  ;;  %v352_v41 = vpop.f32.mrb[1].mxu0 }
  0xef   : > { %v353_v42 = vadd.f32 %v634_v38, %v352_v41 }
  0xf0   : > { %v400_v43 = vmul.f32 0.70710677, %v358_v40  ;;  %v392_v4 = vmul.f32 0.5, %v358_v40 }
  0xf1   : > { %v399_v44 = vmul.f32 0.70710677, %v353_v42  ;;  %v699_v45 = vpop.f32.mrb[2].mxu0  ;;  %v391_v2 = vmul.f32 0.5, %v353_v42 }
  0xf2   : > { %847 = verf.f32 %v400_v43  ;;  %v368_v46 = vadd.f32 %v699_v45, %v634_v38  ;;  %v362_v47 = vpop.f32.mrb[3].mxu0 }
  0xf3   : > { %849 = verf.f32 %v399_v44  ;;  %v363_v48 = vadd.f32 %v634_v38, %v362_v47 }
  0xf4   : > { %v402_v49 = vmul.f32 0.70710677, %v368_v46  ;;  %v394_v12 = vmul.f32 0.5, %v368_v46 }
  0xf5   : > { %v401_v50 = vmul.f32 0.70710677, %v363_v48  ;;  %v702_v51 = vpop.f32.mrb[4].mxu0  ;;  %v393_v10 = vmul.f32 0.5, %v363_v48 }
  0xf6   : > { %851 = verf.f32 %v402_v49  ;;  %v378_v52 = vadd.f32 %v702_v51, %v634_v38  ;;  %v372_v53 = vpop.f32.mrb[5].mxu0 }
  0xf7   : > { %853 = verf.f32 %v401_v50  ;;  %v373_v54 = vadd.f32 %v634_v38, %v372_v53 }
  0xf8   : > { %v404_v55 = vmul.f32 0.70710677, %v378_v52  ;;  %v396_v20 = vmul.f32 0.5, %v378_v52 }
  0xf9   : > { %v403_v56 = vmul.f32 0.70710677, %v373_v54  ;;  %v705_v57 = vpop.f32.mrb[6].mxu0  ;;  %v395_v18 = vmul.f32 0.5, %v373_v54 }
  0xfa   : > { %855 = verf.f32 %v404_v55  ;;  %v388_v58 = vadd.f32 %v705_v57, %v634_v38  ;;  %v382_v59 = vpop.f32.mrb[7].mxu0 }
  0xfb   : > { %857 = verf.f32 %v403_v56  ;;  %v383_v60 = vadd.f32 %v634_v38, %v382_v59 }
  0xfc   : > { %v848_v61 = vpop.eup %847  ;;  %v406_v62 = vmul.f32 0.70710677, %v388_v58  ;;  %v398_v28 = vmul.f32 0.5, %v388_v58 }
  0xfd   : > { %v850_v63 = vpop.eup %849  ;;  %v416_v0 = vadd.f32 1.0, %v848_v61  ;;  %v405_v1 = vmul.f32 0.70710677, %v383_v60  ;;  %v397_v26 = vmul.f32 0.5, %v383_v60 }
  0xfe   : > { %v415_v3 = vadd.f32 1.0, %v850_v63  ;;  %859 = verf.f32 %v406_v62 }
  0xff   : > { %861 = verf.f32 %v405_v1  ;;  %v424_v8 = vmul.f32 %v416_v0, %v392_v4 }
 0x100   : > { %v852_v5 = vpop.eup %851  ;;  %v423_v6 = vmul.f32 %v415_v3, %v391_v2 }
 0x101   : > { %v854_v7 = vpop.eup %853  ;;  %v418_v9 = vadd.f32 1.0, %v852_v5 }
 0x102   : > { %738 = vmatprep.mubr.f32.mxu0 %v423_v6  ;;  %v417_v11 = vadd.f32 1.0, %v854_v7 }
 0x103   : > { %739 = vmatmul.mubr.f32.vlgmr.msra.gmra.mrb[8].mxu0 %v424_v8  ;;  %v426_v17 = vmul.f32 %v418_v9, %v394_v12 }
 0x104   : > { %v856_v13 = vpop.eup %855  ;;  %v425_v14 = vmul.f32 %v417_v11, %v393_v10 }
 0x105   : > { %v858_v15 = vpop.eup %857  ;;  %v420_v16 = vadd.f32 1.0, %v856_v13 }
 0x106   : > { %v419_v19 = vadd.f32 1.0, %v858_v15  ;;  %741 = vmatprep.mubr.f32.mxu1 %v425_v14 }
 0x107   : > { %742 = vmatmul.mubr.f32.vlgmr.msra.gmra.mrb[0].mxu1 %v426_v17  ;;  %v428_v25 = vmul.f32 %v420_v16, %v396_v20 }
 0x108   : > { %v860_v21 = vpop.eup %859  ;;  %v427_v22 = vmul.f32 %v419_v19, %v395_v18 }
 0x109   : > { %v862_v23 = vpop.eup %861  ;;  %v422_v24 = vadd.f32 1.0, %v860_v21 }
 0x10a   : > { %v421_v27 = vadd.f32 1.0, %v862_v23  ;;  %744 = vmatprep.mubr.f32.mxu1 %v427_v22 }
 0x10b   : > { %745 = vmatmul.mubr.f32.gmra.mrb[2].mxu1 %v428_v25  ;;  %v430_v30 = vmul.f32 %v422_v24, %v398_v28 }
 0x10c   : > { %v429_v29 = vmul.f32 %v421_v27, %v397_v26 }
 0x10e   : > { %747 = vmatprep.mubr.f32.mxu1 %v429_v29 }
 0x10f   : > { %748 = vmatmul.mubr.f32.gmra.mrb[4].mxu1 %v430_v30 }
 0x1d6   : > { %v740_v32 = vpop.f32.mrb[8].mxu0 }
 0x1d7   : > { %v510_v33 = vadd.f32 %v740_v32, %v643_v31  ;;  %v504_v34 = vpop.f32.mrb[9].mxu0 }
 0x1d8   : > { %v505_v35 = vadd.f32 %v643_v31, %v504_v34 }
 0x1d9   : > { %544 = vst [vmem:[%s218_s8 + $0x8] sm:$0xff] %v510_v33 }
 0x1da   : > { %543 = vst [vmem:[%s218_s8] sm:$0xff] %v505_v35  ;;  %v743_v36 = vpop.f32.mrb[0].mxu1 }
 0x1db   : > { %v520_v37 = vadd.f32 %v743_v36, %v643_v31  ;;  %v514_v38 = vpop.f32.mrb[1].mxu1 }
 0x1dc   : > { %v515_v39 = vadd.f32 %v643_v31, %v514_v38 }
 0x1dd   : > { %546 = vst [vmem:[%s218_s8 + $0x18] sm:$0xff] %v520_v37 }
 0x1de   : > { %545 = vst [vmem:[%s218_s8 + $0x10] sm:$0xff] %v515_v39  ;;  %v746_v40 = vpop.f32.mrb[2].mxu1 }
 0x1df   : > { %v530_v41 = vadd.f32 %v746_v40, %v643_v31  ;;  %v524_v42 = vpop.f32.mrb[3].mxu1 }
 0x1e0   : > { %v525_v43 = vadd.f32 %v643_v31, %v524_v42 }
 0x1e1   : > { %548 = vst [vmem:[%s218_s8 + $0x28] sm:$0xff] %v530_v41 }
 0x1e2   : > { %547 = vst [vmem:[%s218_s8 + $0x20] sm:$0xff] %v525_v43  ;;  %v749_v44 = vpop.f32.mrb[4].mxu1 }
 0x1e3   : > { %v540_v45 = vadd.f32 %v749_v44, %v643_v31  ;;  %v534_v46 = vpop.f32.mrb[5].mxu1 }
 0x1e4   : > { %v535_v47 = vadd.f32 %v643_v31, %v534_v46 }
 0x1e5   : > { %550 = vst [vmem:[%s218_s8 + $0x38] sm:$0xff] %v540_v45 }
 0x1e6   : > { %549 = vst [vmem:[%s218_s8 + $0x30] sm:$0xff] %v535_v47 }
 0x1e7   : > { %876 = shalt.err (!%p873_p3)
}
 0x1e8   : > { %s877_s23 = scalar_lea.hbm %s1093_s14, 1024  ;;  %s881_s30 = scalar_lea.hbm %s1145_s5, 2048 }
 0x1e9   : > { %p878_p4 = scmp.ne.s32.totalorder %s1093_s14, %s877_s23  ;;  %p882_p9 = scmp.lt.u32.totalorder %s1093_s14, %s1145_s5 }
 0x1ea   : > { %p883_p10 = scmp.lt.u32.totalorder %s881_s30, %s877_s23  ;;  %p885_p12 = scmp.lt.u32.totalorder %s877_s23, %s1093_s14 }
 0x1eb   : > { %p879_p7 = pnand %p878_p4, %p998_p5 }
 0x1ec   : > { %p884_p11 = por %p883_p10, %p882_p9 }
 0x1ed   : > { %p880_p8 = pneg %p879_p7 }
 0x1ee   : > { %p886_p13 = por %p885_p12, %p884_p11 }
 0x1f0   : > { %p887_p0 = pnand %p886_p13, %p880_p8 }
 0x1f2   : > { %890 = shalt.err (!%p887_p0)
}
 0x1f3   : > { %s928_s8 = smov 128   ;;  %s929_s9 = smov 8  }
 0x1f4   : > { %806 = dma.vmem_to_hbm [thread:$0]  (%p998_p5), %s1095_s10, 1024, %s1093_s14, %s1099_s22, %s928_s8, %s928_s8, %s929_s9  }
 0x1f5 PF: > { %p812_p1 = scmp.ge.s32.totalorder %s925_s21, 2  ;;  %s580_s12 = sand.u32 1, %s913_s18  }
 0x1f6   : > { %s581_s13 = scalar_lea.sflag [#allocation3], %s580_s12 }
 0x1f7   : > { %p809_p2 = pnand %p812_p1, %p1002_p6 }
 0x1f9   : > { %908 = dma.done.wait (!%p809_p2), %s581_s13, 1024  }
 0x1fa   : > { %910 = vsyncadd (!%p809_p2), %s581_s13, 4294966272  ;;  %p15_p3 = scmp.ge.s32.totalorder %s985_s24, 4   ;;  %s1148_s18 = smov %s917_s19 }
 0x1fb   : > { %s1149_s19 = smov %s921_s20  ;;  %s1150_s20 = smov %s996_s27 }
 0x1fc   : > { %s1151_s21 = smov %s985_s24  ;;  %17 = sbr.rel (!%p15_p3) target bundleno = 3 (0x3), region = 75 }
 0x203   :  { %586 = vsyncpa [#allocation3], 1 }
 0x204   :  { %588 = vsyncpa [#allocation3 + $0x1], 1 }

</bundles_post_ra>
